<compile_context>
chip_gen: v6e
topology: v6e:2x2x1
jax: 0.10.0
libtpu: 0.0.40
codegen_flags: <defaults>
</compile_context>

<pallas_src>
import numpy as np
import jax
import jax.numpy as jnp
from jax import lax
from jax.experimental import pallas as pl
from jax.experimental.pallas import tpu as pltpu

NUM_OPS = 2
MAGNITUDE = 9
NUM_MAGNITUDE_BINS = 31


# ---------------------------------------------------------------------------
# augmentation space (mirror of RandAugment._augmentation_space)
# ---------------------------------------------------------------------------
def augmentation_space(num_bins, image_size):
    H, W = image_size
    lin = lambda a, b: np.linspace(a, b, num_bins)
    return {
        "Identity": (np.array(0.0), False),
        "ShearX": (lin(0.0, 0.3), True),
        "ShearY": (lin(0.0, 0.3), True),
        "TranslateX": (lin(0.0, 150.0 / 331.0 * W), True),
        "TranslateY": (lin(0.0, 150.0 / 331.0 * H), True),
        "Rotate": (lin(0.0, 30.0), True),
        "Brightness": (lin(0.0, 0.9), True),
        "Color": (lin(0.0, 0.9), True),
        "Contrast": (lin(0.0, 0.9), True),
        "Sharpness": (lin(0.0, 0.9), True),
        "Posterize": (
            8 - np.round(np.arange(num_bins) / ((num_bins - 1) / 4)).astype(np.int32),
            False,
        ),
        "Solarize": (lin(255.0, 0.0), False),
        "AutoContrast": (np.array(0.0), False),
        "Equalize": (np.array(0.0), False),
    }


# ---------------------------------------------------------------------------
# in-kernel helpers.  x: (C, H*W) float32, pixel values in [0, 255].
# ---------------------------------------------------------------------------
def _gray(x):
    # torchvision rgb_to_grayscale coefficients.
    if x.shape[0] == 3:
        return 0.2989 * x[0:1] + 0.587 * x[1:2] + 0.114 * x[2:3]   # (1, H*W)
    return x[0:1]


def _shifted(x, dr, dc, W):
    """Circular shift in the flattened layout: out[h, w] reads x[h - dr, w - dc].

    Wrap-around pixels are masked by the caller (zero fill / border select),
    so the circular nature of the roll never leaks into the result.
    """
    HW = x.shape[1]
    return pltpu.roll(x, shift=(dr * W + dc) % HW, axis=1)


def _apply_op_in_kernel(x, op_name, magnitude, H, W, col, row):
    C, HW = x.shape
    if op_name == "Identity":
        return x
    if op_name == "Brightness":
        return jnp.clip(x * (1.0 + magnitude), 0.0, 255.0)
    if op_name == "Color":
        if C != 3:
            return x
        g = jnp.floor(_gray(x))                         # uint8 truncation of gray
        return jnp.clip(g + (1.0 + magnitude) * (x - g), 0.0, 255.0)
    if op_name == "Contrast":
        m = jnp.mean(jnp.floor(_gray(x)), keepdims=True)            # (1, 1)
        return jnp.clip(m + (1.0 + magnitude) * (x - m), 0.0, 255.0)
    if op_name == "Posterize":
        step = float(2 ** (8 - int(magnitude)))                     # power of two
        return jnp.floor(x * (1.0 / step)) * step                   # mul, not div
    if op_name == "Solarize":
        return jnp.where(x < magnitude, x, 255.0 - x)
    if op_name == "AutoContrast":
        lo = jnp.min(x, axis=1, keepdims=True)
        hi = jnp.max(x, axis=1, keepdims=True)
        scale = 255.0 / jnp.maximum(hi - lo, 1.0)
        y = jnp.clip((x - lo) * scale, 0.0, 255.0)
        return jnp.where(hi > lo, y, x)
    if op_name == "TranslateX":
        # torchvision convention: positive translate shifts content right,
        # out[h, w] = img[h, w - t], zero fill (fill=None -> 0) outside.
        t = int(magnitude)
        if t == 0:
            return x
        y = _shifted(x, 0, t, W)
        valid = (col - t >= 0) & (col - t < W)
        return jnp.where(valid, y, 0.0)
    if op_name == "TranslateY":
        t = int(magnitude)
        if t == 0:
            return x
        y = _shifted(x, t, 0, W)
        valid = (row - t >= 0) & (row - t < H)
        return jnp.where(valid, y, 0.0)
    if op_name == "Sharpness":
        # PIL smoothing kernel [[1,1,1],[1,5,1],[1,1,1]]/13, border pixels kept,
        # then blended with the original (ratio = 1 + magnitude).
        factor = 1.0 + magnitude
        blur = 5.0 * x
        for dr in (-1, 0, 1):
            for dc in (-1, 0, 1):
                if dr == 0 and dc == 0:
                    continue
                blur = blur + _shifted(x, dr, dc, W)   # symmetric: direction-agnostic
        blur = jnp.round(jnp.clip(blur * (1.0 / 13.0), 0.0, 255.0))
        interior = (row >= 1) & (row <= H - 2) & (col >= 1) & (col <= W - 2)
        degenerate = jnp.where(interior, blur, x)
        return jnp.clip(degenerate + factor * (x - degenerate), 0.0, 255.0)
    # TODO(synk): ShearX / ShearY / Rotate (affine resampling with interpolation)
    # and Equalize (256-bin histogram remap) have no clean in-kernel equivalent;
    # they fall back to Identity.
    return x


# ---------------------------------------------------------------------------
# Pallas kernel: sequential sampled ops + uint8 quantization between ops
# ---------------------------------------------------------------------------
def make_kernel(ops_chain, H, W):
    needs_grid = any(n in ("TranslateX", "TranslateY", "Sharpness")
                     for n, _ in ops_chain)

    def kernel(img_ref, out_ref):
        x = img_ref[...].astype(jnp.float32)            # (C, H*W), pixels 0..255
        C, HW = x.shape
        if needs_grid:
            # hoisted iotas: built once, reused by every op in the chain
            flat = lax.broadcasted_iota(jnp.int32, (C, HW), 1)
            col, row = flat % W, flat // W
        else:
            col = row = None
        for op_name, magnitude in ops_chain:
            x = _apply_op_in_kernel(x, op_name, magnitude, H, W, col, row)
            # emulate the uint8 round-trip between sequential torchvision ops
            x = jnp.round(jnp.clip(x, 0.0, 255.0))
        out_ref[...] = x.astype(out_ref.dtype)           # single lane-dense bf16 store
    return kernel


def randaugment(img, *, num_ops=NUM_OPS, magnitude=MAGNITUDE,
                num_magnitude_bins=NUM_MAGNITUDE_BINS, seed=0):
    img = jnp.asarray(img)
    squeeze = img.ndim == 3
    if squeeze:
        img = img[None]
    N, C, H, W = img.shape
    HW = H * W

    op_meta = augmentation_space(num_magnitude_bins, (H, W))
    op_names = list(op_meta.keys())

    # Randomness resolved at trace time, mirroring RandAugment.forward's
    # Python-level torch.randint sampling (same ops applied to every image of
    # the batch, exactly as a single forward() call over a batched tensor).
    rng = np.random.default_rng(seed)
    ops_chain = []
    for _ in range(num_ops):
        op_index = int(rng.integers(len(op_meta)))
        name = op_names[op_index]
        magnitudes, signed = op_meta[name]
        mag = float(magnitudes[magnitude]) if magnitudes.ndim > 0 else 0.0
        if signed and int(rng.integers(2)):
            mag *= -1.0
        ops_chain.append((name, mag))

    kernel = make_kernel(tuple(ops_chain), H, W)

    # Lane-dense layout: (N, C, H*W) so the last dim fills 128-lane vregs.
    # bf16 in/out is lossless for uint8-valued pixels and halves HBM traffic.
    x = img.reshape(N, C, HW).astype(jnp.bfloat16)

    out = pl.pallas_call(
        kernel,
        out_shape=jax.ShapeDtypeStruct((N, C, HW), jnp.bfloat16),
        grid=(N,),
        in_specs=[pl.BlockSpec((None, C, HW), lambda n: (n, 0, 0))],
        out_specs=pl.BlockSpec((None, C, HW), lambda n: (n, 0, 0)),
        compiler_params=pltpu.CompilerParams(
            dimension_semantics=("parallel",)),       # batch pipelining / megacore
    )(x)

    out = out.reshape(N, C, H, W)
    return out[0] if squeeze else out


if __name__ == "__main__":
    key = jax.random.PRNGKey(0)
    # batch of small RGB images, uint8 pixels, NCHW layout
    img = jax.random.randint(key, (2, 3, 16, 16), 0, 256,
                             dtype=jnp.int32).astype(jnp.uint8)

    out = randaugment(img)
    jax.block_until_ready(out)

    assert out.shape == (2, 3, 16, 16) and out.dtype == jnp.bfloat16
    outf = out.astype(jnp.float32)
    assert bool(jnp.all(jnp.isfinite(outf)))
    assert bool(jnp.all((outf >= 0.0) & (outf <= 255.0)))
    assert bool(jnp.all(outf == jnp.round(outf)))        # uint8-valued pixels
    print("KERNEL_OK")
</pallas_src>

<mosaic_0001>
module attributes {stable_mosaic.version = 11 : i64} {
  func.func @kernel(%arg0: i32, %arg1: memref<1x3x256xbf16, #tpu.memory_space<vmem>>, %arg2: memref<1x3x256xbf16, #tpu.memory_space<vmem>>) attributes {dimension_semantics = [#tpu.dimension_semantics<parallel>], iteration_bounds = array<i64: 2>, scalar_prefetch = 0 : i64, scratch_operands = 0 : i64, tpu.core_type = #tpu.core_type<tc>, window_params = [{transform_indices = @transform_0, window_bounds = array<i64: 1, 3, 256>}, {transform_indices = @transform_1, window_bounds = array<i64: 1, 3, 256>}]} {
    %c0 = arith.constant 0 : index
    %c0_0 = arith.constant 0 : index
    %c0_1 = arith.constant 0 : index
    %0 = vector.load %arg1[%c0, %c0_0, %c0_1] : memref<1x3x256xbf16, #tpu.memory_space<vmem>>, vector<1x3x256xbf16>
    %1 = vector.shape_cast %0 : vector<1x3x256xbf16> to vector<3x256xbf16>
    %2 = arith.extf %1 : vector<3x256xbf16> to vector<3x256xf32>
    %cst = arith.constant 1.785000e+02 : f32
    %3 = vector.broadcast %cst : f32 to vector<3x256xf32>
    %4 = arith.cmpf olt, %2, %3 : vector<3x256xf32>
    %cst_2 = arith.constant 2.550000e+02 : f32
    %5 = vector.broadcast %cst_2 : f32 to vector<3x256xf32>
    %6 = arith.subf %5, %2 : vector<3x256xf32>
    %7 = arith.select %4, %2, %6 : vector<3x256xi1>, vector<3x256xf32>
    %cst_3 = arith.constant 0.000000e+00 : f32
    %cst_4 = arith.constant 2.550000e+02 : f32
    %8 = vector.broadcast %cst_3 : f32 to vector<3x256xf32>
    %9 = arith.maximumf %8, %7 : vector<3x256xf32>
    %10 = vector.broadcast %cst_4 : f32 to vector<3x256xf32>
    %11 = arith.minimumf %10, %9 : vector<3x256xf32>
    %12 = math.roundeven %11 : vector<3x256xf32>
    %13 = vector.extract_strided_slice %12 {offsets = [0, 0], sizes = [1, 256], strides = [1, 1]} : vector<3x256xf32> to vector<1x256xf32>
    %cst_5 = arith.constant 2.989000e-01 : f32
    %14 = vector.broadcast %cst_5 : f32 to vector<1x256xf32>
    %15 = arith.mulf %14, %13 : vector<1x256xf32>
    %16 = vector.extract_strided_slice %12 {offsets = [1, 0], sizes = [1, 256], strides = [1, 1]} : vector<3x256xf32> to vector<1x256xf32>
    %cst_6 = arith.constant 5.870000e-01 : f32
    %17 = vector.broadcast %cst_6 : f32 to vector<1x256xf32>
    %18 = arith.mulf %17, %16 : vector<1x256xf32>
    %19 = arith.addf %15, %18 : vector<1x256xf32>
    %20 = vector.extract_strided_slice %12 {offsets = [2, 0], sizes = [1, 256], strides = [1, 1]} : vector<3x256xf32> to vector<1x256xf32>
    %cst_7 = arith.constant 1.140000e-01 : f32
    %21 = vector.broadcast %cst_7 : f32 to vector<1x256xf32>
    %22 = arith.mulf %21, %20 : vector<1x256xf32>
    %23 = arith.addf %19, %22 : vector<1x256xf32>
    %24 = math.floor %23 : vector<1x256xf32>
    %25 = vector.shape_cast %24 : vector<1x256xf32> to vector<1x1x256xf32>
    %cst_8 = arith.constant dense<0.000000e+00> : vector<1xf32>
    %26 = vector.multi_reduction <add>, %25, %cst_8 [1, 2] : vector<1x1x256xf32> to vector<1xf32>
    %27 = vector.shape_cast %26 : vector<1xf32> to vector<1x1x1xf32>
    %28 = vector.extract %27[0, 0, 0] : f32 from vector<1x1x1xf32>
    %29 = vector.broadcast %28 : f32 to vector<1x1xf32>
    %cst_9 = arith.constant 2.560000e+02 : f32
    %30 = vector.broadcast %cst_9 : f32 to vector<1x1xf32>
    %31 = arith.divf %29, %30 : vector<1x1xf32>
    %32 = vector.broadcast %31 : vector<1x1xf32> to vector<3x256xf32>
    %33 = arith.subf %12, %32 : vector<3x256xf32>
    %cst_10 = arith.constant 7.300000e-01 : f32
    %34 = vector.broadcast %cst_10 : f32 to vector<3x256xf32>
    %35 = arith.mulf %34, %33 : vector<3x256xf32>
    %36 = vector.broadcast %31 : vector<1x1xf32> to vector<3x256xf32>
    %37 = arith.addf %36, %35 : vector<3x256xf32>
    %cst_11 = arith.constant 0.000000e+00 : f32
    %cst_12 = arith.constant 2.550000e+02 : f32
    %38 = vector.broadcast %cst_11 : f32 to vector<3x256xf32>
    %39 = arith.maximumf %38, %37 : vector<3x256xf32>
    %40 = vector.broadcast %cst_12 : f32 to vector<3x256xf32>
    %41 = arith.minimumf %40, %39 : vector<3x256xf32>
    %cst_13 = arith.constant 0.000000e+00 : f32
    %cst_14 = arith.constant 2.550000e+02 : f32
    %42 = vector.broadcast %cst_13 : f32 to vector<3x256xf32>
    %43 = arith.maximumf %42, %41 : vector<3x256xf32>
    %44 = vector.broadcast %cst_14 : f32 to vector<3x256xf32>
    %45 = arith.minimumf %44, %43 : vector<3x256xf32>
    %46 = math.roundeven %45 : vector<3x256xf32>
    %47 = arith.truncf %46 : vector<3x256xf32> to vector<3x256xbf16>
    %c0_15 = arith.constant 0 : index
    %c0_16 = arith.constant 0 : index
    %c0_17 = arith.constant 0 : index
    %48 = vector.load %arg2[%c0_15, %c0_16, %c0_17] : memref<1x3x256xbf16, #tpu.memory_space<vmem>>, vector<1x3x256xbf16>
    %49 = vector.shape_cast %48 : vector<1x3x256xbf16> to vector<3x256xbf16>
    %50 = vector.shape_cast %47 : vector<3x256xbf16> to vector<1x3x256xbf16>
    tpu.vector_store %arg2[%c0_15, %c0_16, %c0_17], %50 {strides = array<i32>} : memref<1x3x256xbf16, #tpu.memory_space<vmem>>, vector<1x3x256xbf16>,
    return
  }
  func.func @transform_0(%arg0: i32) -> (i32, i32, i32) {
    %c0_i32 = arith.constant 0 : i32
    %c0_i32_0 = arith.constant 0 : i32
    %c0_i32_1 = arith.constant 0 : i32
    return %arg0, %c0_i32, %c0_i32_0 : i32, i32, i32
  }
  func.func @transform_1(%arg0: i32) -> (i32, i32, i32) {
    %c0_i32 = arith.constant 0 : i32
    %c0_i32_0 = arith.constant 0 : i32
    %c0_i32_1 = arith.constant 0 : i32
    return %arg0, %c0_i32, %c0_i32_0 : i32, i32, i32
  }
}

</mosaic_0001>

<bundles_post_ra>
// kernel: tpu_custom_call.1
= control target key start
LH: loop header
LB: loop body
LE: loop exit
PB: predicated region body
PF: predicated region fallthrough
CT: control target
= control target key end

     0   :  { %s318_s6 = smov 0   ;;  %s342_s0 = inlined_call_operand.vmem [shape: bf16[2,3,256], index: 0, kind: input, shape index: {}]   ;;  %s343_s1 = inlined_call_operand.vmem [shape: bf16[2,3,256], index: 1, kind: output, shape index: {}]  }
   0x1 LB: > { %s255_s7 = sadd.s32 4294967295, %s305_s6   ;;  %p259_p0 = scmp.ge.s32.totalorder %s305_s6, 1  ;;  %s305_s6 = sphi %s318_s6, %s11_s6  }
   0x2   : > { %p87_p1 = scmp.lt.s32.totalorder %s305_s6, 3 }
   0x4   : > { %p88_p2 = pnand %p259_p0, %p87_p1 }
   0x5   : > { %p107_p3 = scmp.lt.s32.totalorder (!%p88_p2), %s255_s7, 1 }
   0x6   : > { %91 = sbr.rel (%p88_p2) target bundleno = 276 (0x114), region = 24 }
   0xb   : > { %s345_s7 = smov (!%p107_p3, %s255_s7), 1  ;;  %v140_v12 = vlaneseq  ;;  %vm150_vm2 = vcmask 1040384   ;;  %v307_v44 = vmov 1983009808   ;;  %vm190_vm3 = vcmask 1041408  }
   0xc   : > { %s270_s8 = sshll.u32 %s345_s7, 2  ;;  %v183_v45 = vunpack.c.l.s4 %v307_v44  ;;  %vm191_vm4 = vsmask.f32 1280  ;;  %vm193_vm5 = vcmask 1043458   ;;  %vm194_vm6 = vsmask.f32 3328 }
   0xd   : > { %s111_s11 = scalar_lea.vmem %s342_s0, %s270_s8  ;;  %v141_v19 = vshrl.u32 %v140_v12, 7  ;;  %vm192_vm8 = vmand %vm190_vm3, %vm191_vm4  ;;  %s116_s15 = scalar_lea.vmem %s343_s1, %s270_s8 }
   0xe   : > { %v117_v0 = vld [vmem:[%s111_s11] sm:$0xf]  ;;  %v184_v50 = vunpack.c.0.s8 %v183_v45  ;;  %vm195_vm9 = vmand %vm193_vm5, %vm194_vm6 }
   0xf   : > { %v118_v1 = vunpack.c.l.bf16 %v117_v0  ;;  %v142_v22 = vsub.s32 0, %v141_v19  ;;  %v146_v23 = vsub.s32 4, %v141_v19  ;;  %vm196_vm10 = vmor %vm195_vm9, %vm192_vm8  ;;  %v197_v56 = vld [vmem:[%s116_s15] sm:$0xf] }
  0x10   : > { %v187_v53 = vsub.s32 %v184_v50, %v141_v19 }
  0x11   : > { %vm119_vm0 = vcmp.lt.f32.partialorder %v118_v1, 178.5  ;;  %v120_v2 = vsub.f32 255.0, %v118_v1 }
  0x13   : > { %v121_v3 = vsel %vm119_vm0, %v118_v1, %v120_v2 }
  0x14   : > { %v122_v4 = vmax.f32 %v121_v3, 0.0 }
  0x16   : > { %v123_v5 = vmin.f32 %v122_v4, 255.0 }
  0x18   : > { %v274_v6 = vcvt.f32.s32 %v123_v5  ;;  %v272_v7 = vand.u32 2147483647, %v123_v5  ;;  %v277_v9 = vand.u32 2147483648, %v123_v5 }
  0x1a   : > { %v275_v8 = vcvt.s32.f32 %v274_v6  ;;  %vm273_vm1 = vcmp.lt.f32.partialorder %v272_v7, 8388608.0 }
  0x1c   : > { %v276_v10 = vand.u32 2147483647, %v275_v8 }
  0x1e   : > { %v278_v11 = vor.u32 %v277_v9, %v276_v10 }
  0x20   : > { %v279_v13 = vsel %vm273_vm1, %v278_v11, %v123_v5 }
  0x21   : > { %v125_v14 = vmul.f32 0.2989, %v279_v13  ;;  %v126_v15 = vmul.f32 0.587, %v279_v13  ;;  %v132_v16 = vmul.f32 0.114, %v279_v13 }
  0x23   : > { %v264_v17 = vrot.slane %v126_v15, 9  ;;  %v265_v18 = vrot.slane %v132_v16, 10 }
  0x25   : > { %v131_v20 = vadd.f32 %v264_v17, %v125_v14 }
  0x27   : > { %v137_v21 = vadd.f32 %v265_v18, %v131_v20 }
  0x29   : > { %v138_v24 = vfloor.f32 %v137_v21 }
  0x2b   : > { %v143_v25 = vrot.slane %v138_v24, %v142_v22  ;;  %v147_v26 = vrot.slane %v138_v24, %v146_v23 }
  0x2d   : > { %v151_v27 = vsel %vm150_vm2, %v143_v25, 0.0  ;;  %v152_v28 = vsel %vm150_vm2, %v147_v26, 0.0 }
  0x2e   : > { %v153_v29 = vadd.f32 %v152_v28, %v151_v27 }
  0x30   : > { %154 = vadd.xlane.f32.xlu0 %v153_v29 }
  0xb9   : > { %v155_v30 = vpop.xlane.xlu0 %154 }
  0xba   : > { %v156_v31 = vrot.slane %v155_v30, 4 }
  0xbc   : > { %v157_v32 = vadd.f32 %v156_v31, %v155_v30 }
  0xbe   : > { %v158_v33 = vrot.slane %v157_v32, 2 }
  0xc0   : > { %v159_v34 = vadd.f32 %v158_v33, %v157_v32 }
  0xc2   : > { %v160_v35 = vrot.slane %v159_v34, 1 }
  0xc4   : > { %v161_v36 = vadd.f32 %v160_v35, %v159_v34 }
  0xc6   : > { %280 = vpush %v161_v36 }
  0xf7   : > { %s281_s12 = spop %280 }
  0xf8   : > { %v163_v37 = vstv %s281_s12 }
  0xf9   : > { %v165_v38 = vmul.f32 0.00390625, %v163_v37 }
  0xfb   : > { %v166_v39 = vsub.f32 %v279_v13, %v165_v38 }
  0xfd   : > { %v167_v40 = vmul.f32 0.73, %v166_v39 }
  0xff   : > { %v168_v41 = vadd.f32 %v167_v40, %v165_v38 }
 0x101   : > { %v266_v42 = vclamp-gez-f32 %v168_v41, 255.0 }
 0x103   : > { %v284_v43 = vcvt.f32.s32 %v266_v42  ;;  %v282_v47 = vand.u32 2147483647, %v266_v42  ;;  %v287_v49 = vand.u32 2147483648, %v266_v42 }
 0x105   : > { %v285_v46 = vcvt.s32.f32 %v284_v43  ;;  %vm283_vm7 = vcmp.lt.f32.partialorder %v282_v47, 8388608.0 }
 0x107   : > { %v286_v48 = vand.u32 2147483647, %v285_v46 }
 0x109   : > { %v288_v51 = vor.u32 %v287_v49, %v286_v48 }
 0x10b   : > { %v289_v52 = vsel %vm283_vm7, %v288_v51, %v266_v42 }
 0x10c   : > { %v175_v54 = vcombine.high %v289_v52, %v289_v52 }
 0x10e   : > { %v267_v55 = vpack.c.bf16 %v175_v54, %v289_v52 }
 0x110   : > { %v188_v57 = vrot.slane %v267_v55, %v187_v53 }
 0x112   : > { %v198_v58 = vsel %vm196_vm10, %v188_v57, %v197_v56 }
 0x113   : > { %199 = vst [vmem:[%s116_s15] sm:$0xf] %v198_v58 }
 0x114 PF: > { %s11_s6 = sadd.s32 1, %s305_s6  }
 0x115   : > { %p8_p4 = scmp.ge.s32.totalorder %s11_s6, 4  }
 0x117   :  { %10 = sbr.rel (!%p8_p4) target bundleno = 1 (0x1), region = 54 }

</bundles_post_ra>
